<compile_context>
chip_gen: v6e
topology: v6e:2x2x1
jax: 0.10.0
libtpu: 0.0.40
codegen_flags: <defaults>
</compile_context>

<pallas_src>
import math

import jax
import jax.numpy as jnp
from jax.experimental import pallas as pl
from jax.experimental.pallas import tpu as pltpu


def lstm_kernel(x_ref, wih_ref, whh_ref, b_ref, wlin_ref, blin_ref, out_ref):
    """Single-layer LSTM over the sequence dim + linear head.

    x_ref    : (S, H)   input sequence
    wih_ref  : (H, 4H)  input->gates weights (PyTorch weight_ih^T, i/f/o *0.5)
    whh_ref  : (H, 4H)  hidden->gates weights (PyTorch weight_hh^T, i/f/o *0.5)
    b_ref    : (1, 4H)  (bias_ih + bias_hh), i/f/o lanes pre-scaled by 0.5
    wlin_ref : (1, H)   linear head weight row
    blin_ref : (1, 1)   linear head bias
    out_ref  : (S, 1)   predictions
    """
    S = x_ref.shape[0]
    H = whh_ref.shape[0]

    # Hoisted input projection: one (S, 4H) MXU matmul + bias, done once
    # before the serial recurrence.
    gates_x = (jnp.dot(x_ref[...], wih_ref[...],
                       preferred_element_type=jnp.float32)
               + b_ref[...])                                    # (S, 4H)

    # Recurrent weights loaded once, kept resident across the unrolled loop.
    whh = whh_ref[...]                                          # (H, 4H)

    # h0 = c0 = zeros (matches torch.zeros(num_layers, hidden_size)).
    # h/c carried as values (vregs), never round-tripped through VMEM.
    h = jnp.zeros((1, H), jnp.float32)
    c = jnp.zeros((1, H), jnp.float32)

    hs = []
    # Fully unrolled recurrence (S is small and static) — keep it unrolled.
    for t in range(S):
        gates = gates_x[t:t + 1, :] + jnp.dot(
            h, whh, preferred_element_type=jnp.float32)         # (1, 4H)

        # Single EUP pass over the whole 4H-lane vreg. i/f/o lanes hold
        # 0.5 * preactivation (pre-scaled weights), so
        # sigmoid(x) = 0.5 * tanh(x/2) + 0.5; the g lanes hold the plain
        # preactivation so tanh is exact. PyTorch gate order: i, f, g, o.
        ta = jnp.tanh(gates)
        i_g = 0.5 * ta[:, 0 * H:1 * H] + 0.5
        f_g = 0.5 * ta[:, 1 * H:2 * H] + 0.5
        g_g = ta[:, 2 * H:3 * H]
        o_g = 0.5 * ta[:, 3 * H:4 * H] + 0.5

        c = f_g * c + i_g * g_g
        h = o_g * jnp.tanh(c)
        hs.append(h)

    # All hidden states stay register-resident; one concat, then the linear
    # head as VPU multiply + lane reduce (no extra MXU matmul, no scratch).
    z = jnp.concatenate(hs, axis=0)                             # (S, H)
    out_ref[...] = (jnp.sum(z * wlin_ref[...], axis=-1, keepdims=True)
                    + blin_ref[...])                            # (S, 1)


def prepare_lstm_params(w_ih, w_hh, b_ih, b_hh, w_lin, b_lin):
    """One-time (module-init) weight preparation, hoisted off the call path.

    PyTorch layouts: w_ih/w_hh (4H, H), b_ih/b_hh (4H,), w_lin (1, H),
    b_lin (1,). Pre-scales the i/f/o gate blocks by 0.5 for the single-tanh
    activation trick.
    """
    H = w_ih.shape[1]
    # Gate order i, f, g, o: scale i/f/o blocks by 0.5, leave g untouched.
    scale = jnp.concatenate([
        jnp.full((2 * H,), 0.5, jnp.float32),   # i, f
        jnp.ones((H,), jnp.float32),            # g
        jnp.full((H,), 0.5, jnp.float32),       # o
    ])
    wih_t = jnp.asarray(w_ih, jnp.float32).T * scale[None, :]   # (H, 4H)
    whh_t = jnp.asarray(w_hh, jnp.float32).T * scale[None, :]   # (H, 4H)
    b = ((jnp.asarray(b_ih, jnp.float32) + jnp.asarray(b_hh, jnp.float32))
         * scale).reshape(1, 4 * H)                             # (1, 4H)
    wlin_row = jnp.asarray(w_lin, jnp.float32).reshape(1, H)    # (1, H)
    blin = jnp.asarray(b_lin, jnp.float32).reshape(1, 1)        # (1, 1)
    return wih_t, whh_t, b, wlin_row, blin


@jax.jit
def lstm_forward(x, params):
    """x: (S, H) float32; params from prepare_lstm_params."""
    wih_t, whh_t, b, wlin_row, blin = params
    S, H = x.shape
    return pl.pallas_call(
        lstm_kernel,
        out_shape=jax.ShapeDtypeStruct((S, 1), jnp.float32),
        in_specs=[pl.BlockSpec(memory_space=pltpu.MemorySpace.VMEM)] * 6,
        out_specs=pl.BlockSpec(memory_space=pltpu.MemorySpace.VMEM),
    )(jnp.asarray(x, jnp.float32), wih_t, whh_t, b, wlin_row, blin)


def lstm_reference(x, w_ih, w_hh, b_ih, b_hh, w_lin, b_lin):
    """Pure-JAX reference matching PyTorch's unbatched nn.LSTM + nn.Linear."""
    S, H = x.shape
    h = jnp.zeros((H,), jnp.float32)
    c = jnp.zeros((H,), jnp.float32)
    zs = []
    for t in range(S):
        gates = x[t] @ w_ih.T + h @ w_hh.T + b_ih + b_hh
        i_g = jax.nn.sigmoid(gates[0 * H:1 * H])
        f_g = jax.nn.sigmoid(gates[1 * H:2 * H])
        g_g = jnp.tanh(gates[2 * H:3 * H])
        o_g = jax.nn.sigmoid(gates[3 * H:4 * H])
        c = f_g * c + i_g * g_g
        h = o_g * jnp.tanh(c)
        zs.append(h)
    z = jnp.stack(zs)                                           # (S, H)
    return z @ w_lin.T + b_lin                                  # (S, 1)


if __name__ == "__main__":
    time_window = 32   # = input_size = hidden_size
    seq_len = 8

    key = jax.random.PRNGKey(0)
    kx, k1, k2, k3, k4, k5, k6 = jax.random.split(key, 7)

    # Deterministic parameter init mimicking PyTorch's U(-1/sqrt(H), 1/sqrt(H)).
    H = time_window
    bound = 1.0 / math.sqrt(H)
    w_ih = jax.random.uniform(k1, (4 * H, H), jnp.float32, -bound, bound)
    w_hh = jax.random.uniform(k2, (4 * H, H), jnp.float32, -bound, bound)
    b_ih = jax.random.uniform(k3, (4 * H,), jnp.float32, -bound, bound)
    b_hh = jax.random.uniform(k4, (4 * H,), jnp.float32, -bound, bound)
    w_lin = jax.random.uniform(k5, (1, H), jnp.float32, -bound, bound)
    b_lin = jax.random.uniform(k6, (1,), jnp.float32, -bound, bound)

    x = jax.random.normal(kx, (seq_len, time_window), jnp.float32)

    # Weight prep done once (module init), jitted call path after that.
    params = prepare_lstm_params(w_ih, w_hh, b_ih, b_hh, w_lin, b_lin)
    params = jax.tree_util.tree_map(jax.block_until_ready, params)

    out = lstm_forward(x, params)
    jax.block_until_ready(out)
    assert out.shape == (seq_len, 1), out.shape

    ref = lstm_reference(x, w_ih, w_hh, b_ih, b_hh, w_lin, b_lin)
    assert jnp.allclose(out, ref, rtol=1e-4, atol=1e-4), (
        float(jnp.max(jnp.abs(out - ref))))

    print("KERNEL_OK")
</pallas_src>

<mosaic_0001>
module attributes {stable_mosaic.version = 11 : i64} {
  func.func @lstm_kernel(%arg0: memref<8x32xf32, #tpu.memory_space<vmem>>, %arg1: memref<32x128xf32, #tpu.memory_space<vmem>>, %arg2: memref<32x128xf32, #tpu.memory_space<vmem>>, %arg3: memref<1x128xf32, #tpu.memory_space<vmem>>, %arg4: memref<1x32xf32, #tpu.memory_space<vmem>>, %arg5: memref<1x1xf32, #tpu.memory_space<vmem>>, %arg6: memref<8x1xf32, #tpu.memory_space<vmem>>) attributes {dimension_semantics = [], scalar_prefetch = 0 : i64, scratch_operands = 0 : i64, tpu.core_type = #tpu.core_type<tc>} {
    %c0 = arith.constant 0 : index
    %c0_0 = arith.constant 0 : index
    %0 = vector.load %arg0[%c0, %c0_0] : memref<8x32xf32, #tpu.memory_space<vmem>>, vector<8x32xf32>
    %c0_1 = arith.constant 0 : index
    %c0_2 = arith.constant 0 : index
    %1 = vector.load %arg1[%c0_1, %c0_2] : memref<32x128xf32, #tpu.memory_space<vmem>>, vector<32x128xf32>
    %cst = arith.constant dense<0.000000e+00> : vector<8x128xf32>
    %2 = tpu.matmul %0, %1, %cst {dimension_numbers = #tpu.dot_dimension_numbers<[1], [0], [0], [1], [0, 0, 1, 1], [], []>} : vector<8x32xf32>, vector<32x128xf32>, vector<8x128xf32> -> vector<8x128xf32>
    %c0_3 = arith.constant 0 : index
    %c0_4 = arith.constant 0 : index
    %3 = vector.load %arg3[%c0_3, %c0_4] : memref<1x128xf32, #tpu.memory_space<vmem>>, vector<1x128xf32>
    %4 = vector.broadcast %3 : vector<1x128xf32> to vector<8x128xf32>
    %5 = arith.addf %2, %4 : vector<8x128xf32>
    %c0_5 = arith.constant 0 : index
    %c0_6 = arith.constant 0 : index
    %6 = vector.load %arg2[%c0_5, %c0_6] : memref<32x128xf32, #tpu.memory_space<vmem>>, vector<32x128xf32>
    %cst_7 = arith.constant 0.000000e+00 : f32
    %7 = vector.broadcast %cst_7 : f32 to vector<1x32xf32>
    %cst_8 = arith.constant 0.000000e+00 : f32
    %8 = vector.broadcast %cst_8 : f32 to vector<1x32xf32>
    %9 = vector.extract_strided_slice %5 {offsets = [0, 0], sizes = [1, 128], strides = [1, 1]} : vector<8x128xf32> to vector<1x128xf32>
    %cst_9 = arith.constant dense<0.000000e+00> : vector<1x128xf32>
    %10 = tpu.matmul %7, %6, %cst_9 {dimension_numbers = #tpu.dot_dimension_numbers<[1], [0], [0], [1], [0, 0, 1, 1], [], []>} : vector<1x32xf32>, vector<32x128xf32>, vector<1x128xf32> -> vector<1x128xf32>
    %11 = arith.addf %9, %10 : vector<1x128xf32>
    %12 = math.tanh %11 : vector<1x128xf32>
    %13 = vector.extract_strided_slice %12 {offsets = [0, 0], sizes = [1, 32], strides = [1, 1]} : vector<1x128xf32> to vector<1x32xf32>
    %cst_10 = arith.constant 5.000000e-01 : f32
    %14 = vector.broadcast %cst_10 : f32 to vector<1x32xf32>
    %15 = arith.mulf %14, %13 : vector<1x32xf32>
    %cst_11 = arith.constant 5.000000e-01 : f32
    %16 = vector.broadcast %cst_11 : f32 to vector<1x32xf32>
    %17 = arith.addf %15, %16 : vector<1x32xf32>
    %18 = vector.extract_strided_slice %12 {offsets = [0, 32], sizes = [1, 32], strides = [1, 1]} : vector<1x128xf32> to vector<1x32xf32>
    %cst_12 = arith.constant 5.000000e-01 : f32
    %19 = vector.broadcast %cst_12 : f32 to vector<1x32xf32>
    %20 = arith.mulf %19, %18 : vector<1x32xf32>
    %cst_13 = arith.constant 5.000000e-01 : f32
    %21 = vector.broadcast %cst_13 : f32 to vector<1x32xf32>
    %22 = arith.addf %20, %21 : vector<1x32xf32>
    %23 = vector.extract_strided_slice %12 {offsets = [0, 64], sizes = [1, 32], strides = [1, 1]} : vector<1x128xf32> to vector<1x32xf32>
    %24 = vector.extract_strided_slice %12 {offsets = [0, 96], sizes = [1, 32], strides = [1, 1]} : vector<1x128xf32> to vector<1x32xf32>
    %cst_14 = arith.constant 5.000000e-01 : f32
    %25 = vector.broadcast %cst_14 : f32 to vector<1x32xf32>
    %26 = arith.mulf %25, %24 : vector<1x32xf32>
    %cst_15 = arith.constant 5.000000e-01 : f32
    %27 = vector.broadcast %cst_15 : f32 to vector<1x32xf32>
    %28 = arith.addf %26, %27 : vector<1x32xf32>
    %29 = arith.mulf %22, %8 : vector<1x32xf32>
    %30 = arith.mulf %17, %23 : vector<1x32xf32>
    %31 = arith.addf %29, %30 : vector<1x32xf32>
    %32 = math.tanh %31 : vector<1x32xf32>
    %33 = arith.mulf %28, %32 : vector<1x32xf32>
    %34 = vector.extract_strided_slice %5 {offsets = [1, 0], sizes = [1, 128], strides = [1, 1]} : vector<8x128xf32> to vector<1x128xf32>
    %cst_16 = arith.constant dense<0.000000e+00> : vector<1x128xf32>
    %35 = tpu.matmul %33, %6, %cst_16 {dimension_numbers = #tpu.dot_dimension_numbers<[1], [0], [0], [1], [0, 0, 1, 1], [], []>} : vector<1x32xf32>, vector<32x128xf32>, vector<1x128xf32> -> vector<1x128xf32>
    %36 = arith.addf %34, %35 : vector<1x128xf32>
    %37 = math.tanh %36 : vector<1x128xf32>
    %38 = vector.extract_strided_slice %37 {offsets = [0, 0], sizes = [1, 32], strides = [1, 1]} : vector<1x128xf32> to vector<1x32xf32>
    %cst_17 = arith.constant 5.000000e-01 : f32
    %39 = vector.broadcast %cst_17 : f32 to vector<1x32xf32>
    %40 = arith.mulf %39, %38 : vector<1x32xf32>
    %cst_18 = arith.constant 5.000000e-01 : f32
    %41 = vector.broadcast %cst_18 : f32 to vector<1x32xf32>
    %42 = arith.addf %40, %41 : vector<1x32xf32>
    %43 = vector.extract_strided_slice %37 {offsets = [0, 32], sizes = [1, 32], strides = [1, 1]} : vector<1x128xf32> to vector<1x32xf32>
    %cst_19 = arith.constant 5.000000e-01 : f32
    %44 = vector.broadcast %cst_19 : f32 to vector<1x32xf32>
    %45 = arith.mulf %44, %43 : vector<1x32xf32>
    %cst_20 = arith.constant 5.000000e-01 : f32
    %46 = vector.broadcast %cst_20 : f32 to vector<1x32xf32>
    %47 = arith.addf %45, %46 : vector<1x32xf32>
    %48 = vector.extract_strided_slice %37 {offsets = [0, 64], sizes = [1, 32], strides = [1, 1]} : vector<1x128xf32> to vector<1x32xf32>
    %49 = vector.extract_strided_slice %37 {offsets = [0, 96], sizes = [1, 32], strides = [1, 1]} : vector<1x128xf32> to vector<1x32xf32>
    %cst_21 = arith.constant 5.000000e-01 : f32
    %50 = vector.broadcast %cst_21 : f32 to vector<1x32xf32>
    %51 = arith.mulf %50, %49 : vector<1x32xf32>
    %cst_22 = arith.constant 5.000000e-01 : f32
    %52 = vector.broadcast %cst_22 : f32 to vector<1x32xf32>
    %53 = arith.addf %51, %52 : vector<1x32xf32>
    %54 = arith.mulf %47, %31 : vector<1x32xf32>
    %55 = arith.mulf %42, %48 : vector<1x32xf32>
    %56 = arith.addf %54, %55 : vector<1x32xf32>
    %57 = math.tanh %56 : vector<1x32xf32>
    %58 = arith.mulf %53, %57 : vector<1x32xf32>
    %59 = vector.extract_strided_slice %5 {offsets = [2, 0], sizes = [1, 128], strides = [1, 1]} : vector<8x128xf32> to vector<1x128xf32>
    %cst_23 = arith.constant dense<0.000000e+00> : vector<1x128xf32>
    %60 = tpu.matmul %58, %6, %cst_23 {dimension_numbers = #tpu.dot_dimension_numbers<[1], [0], [0], [1], [0, 0, 1, 1], [], []>} : vector<1x32xf32>, vector<32x128xf32>, vector<1x128xf32> -> vector<1x128xf32>
    %61 = arith.addf %59, %60 : vector<1x128xf32>
    %62 = math.tanh %61 : vector<1x128xf32>
    %63 = vector.extract_strided_slice %62 {offsets = [0, 0], sizes = [1, 32], strides = [1, 1]} : vector<1x128xf32> to vector<1x32xf32>
    %cst_24 = arith.constant 5.000000e-01 : f32
    %64 = vector.broadcast %cst_24 : f32 to vector<1x32xf32>
    %65 = arith.mulf %64, %63 : vector<1x32xf32>
    %cst_25 = arith.constant 5.000000e-01 : f32
    %66 = vector.broadcast %cst_25 : f32 to vector<1x32xf32>
    %67 = arith.addf %65, %66 : vector<1x32xf32>
    %68 = vector.extract_strided_slice %62 {offsets = [0, 32], sizes = [1, 32], strides = [1, 1]} : vector<1x128xf32> to vector<1x32xf32>
    %cst_26 = arith.constant 5.000000e-01 : f32
    %69 = vector.broadcast %cst_26 : f32 to vector<1x32xf32>
    %70 = arith.mulf %69, %68 : vector<1x32xf32>
    %cst_27 = arith.constant 5.000000e-01 : f32
    %71 = vector.broadcast %cst_27 : f32 to vector<1x32xf32>
    %72 = arith.addf %70, %71 : vector<1x32xf32>
    %73 = vector.extract_strided_slice %62 {offsets = [0, 64], sizes = [1, 32], strides = [1, 1]} : vector<1x128xf32> to vector<1x32xf32>
    %74 = vector.extract_strided_slice %62 {offsets = [0, 96], sizes = [1, 32], strides = [1, 1]} : vector<1x128xf32> to vector<1x32xf32>
    %cst_28 = arith.constant 5.000000e-01 : f32
    %75 = vector.broadcast %cst_28 : f32 to vector<1x32xf32>
    %76 = arith.mulf %75, %74 : vector<1x32xf32>
    %cst_29 = arith.constant 5.000000e-01 : f32
    %77 = vector.broadcast %cst_29 : f32 to vector<1x32xf32>
    %78 = arith.addf %76, %77 : vector<1x32xf32>
    %79 = arith.mulf %72, %56 : vector<1x32xf32>
    %80 = arith.mulf %67, %73 : vector<1x32xf32>
    %81 = arith.addf %79, %80 : vector<1x32xf32>
    %82 = math.tanh %81 : vector<1x32xf32>
    %83 = arith.mulf %78, %82 : vector<1x32xf32>
    %84 = vector.extract_strided_slice %5 {offsets = [3, 0], sizes = [1, 128], strides = [1, 1]} : vector<8x128xf32> to vector<1x128xf32>
    %cst_30 = arith.constant dense<0.000000e+00> : vector<1x128xf32>
    %85 = tpu.matmul %83, %6, %cst_30 {dimension_numbers = #tpu.dot_dimension_numbers<[1], [0], [0], [1], [0, 0, 1, 1], [], []>} : vector<1x32xf32>, vector<32x128xf32>, vector<1x128xf32> -> vector<1x128xf32>
    %86 = arith.addf %84, %85 : vector<1x128xf32>
    %87 = math.tanh %86 : vector<1x128xf32>
    %88 = vector.extract_strided_slice %87 {offsets = [0, 0], sizes = [1, 32], strides = [1, 1]} : vector<1x128xf32> to vector<1x32xf32>
    %cst_31 = arith.constant 5.000000e-01 : f32
    %89 = vector.broadcast %cst_31 : f32 to vector<1x32xf32>
    %90 = arith.mulf %89, %88 : vector<1x32xf32>
    %cst_32 = arith.constant 5.000000e-01 : f32
    %91 = vector.broadcast %cst_32 : f32 to vector<1x32xf32>
    %92 = arith.addf %90, %91 : vector<1x32xf32>
    %93 = vector.extract_strided_slice %87 {offsets = [0, 32], sizes = [1, 32], strides = [1, 1]} : vector<1x128xf32> to vector<1x32xf32>
    %cst_33 = arith.constant 5.000000e-01 : f32
    %94 = vector.broadcast %cst_33 : f32 to vector<1x32xf32>
    %95 = arith.mulf %94, %93 : vector<1x32xf32>
    %cst_34 = arith.constant 5.000000e-01 : f32
    %96 = vector.broadcast %cst_34 : f32 to vector<1x32xf32>
    %97 = arith.addf %95, %96 : vector<1x32xf32>
    %98 = vector.extract_strided_slice %87 {offsets = [0, 64], sizes = [1, 32], strides = [1, 1]} : vector<1x128xf32> to vector<1x32xf32>
    %99 = vector.extract_strided_slice %87 {offsets = [0, 96], sizes = [1, 32], strides = [1, 1]} : vector<1x128xf32> to vector<1x32xf32>
    %cst_35 = arith.constant 5.000000e-01 : f32
    %100 = vector.broadcast %cst_35 : f32 to vector<1x32xf32>
    %101 = arith.mulf %100, %99 : vector<1x32xf32>
    %cst_36 = arith.constant 5.000000e-01 : f32
    %102 = vector.broadcast %cst_36 : f32 to vector<1x32xf32>
    %103 = arith.addf %101, %102 : vector<1x32xf32>
    %104 = arith.mulf %97, %81 : vector<1x32xf32>
    %105 = arith.mulf %92, %98 : vector<1x32xf32>
    %106 = arith.addf %104, %105 : vector<1x32xf32>
    %107 = math.tanh %106 : vector<1x32xf32>
    %108 = arith.mulf %103, %107 : vector<1x32xf32>
    %109 = vector.extract_strided_slice %5 {offsets = [4, 0], sizes = [1, 128], strides = [1, 1]} : vector<8x128xf32> to vector<1x128xf32>
    %cst_37 = arith.constant dense<0.000000e+00> : vector<1x128xf32>
    %110 = tpu.matmul %108, %6, %cst_37 {dimension_numbers = #tpu.dot_dimension_numbers<[1], [0], [0], [1], [0, 0, 1, 1], [], []>} : vector<1x32xf32>, vector<32x128xf32>, vector<1x128xf32> -> vector<1x128xf32>
    %111 = arith.addf %109, %110 : vector<1x128xf32>
    %112 = math.tanh %111 : vector<1x128xf32>
    %113 = vector.extract_strided_slice %112 {offsets = [0, 0], sizes = [1, 32], strides = [1, 1]} : vector<1x128xf32> to vector<1x32xf32>
    %cst_38 = arith.constant 5.000000e-01 : f32
    %114 = vector.broadcast %cst_38 : f32 to vector<1x32xf32>
    %115 = arith.mulf %114, %113 : vector<1x32xf32>
    %cst_39 = arith.constant 5.000000e-01 : f32
    %116 = vector.broadcast %cst_39 : f32 to vector<1x32xf32>
    %117 = arith.addf %115, %116 : vector<1x32xf32>
    %118 = vector.extract_strided_slice %112 {offsets = [0, 32], sizes = [1, 32], strides = [1, 1]} : vector<1x128xf32> to vector<1x32xf32>
    %cst_40 = arith.constant 5.000000e-01 : f32
    %119 = vector.broadcast %cst_40 : f32 to vector<1x32xf32>
    %120 = arith.mulf %119, %118 : vector<1x32xf32>
    %cst_41 = arith.constant 5.000000e-01 : f32
    %121 = vector.broadcast %cst_41 : f32 to vector<1x32xf32>
    %122 = arith.addf %120, %121 : vector<1x32xf32>
    %123 = vector.extract_strided_slice %112 {offsets = [0, 64], sizes = [1, 32], strides = [1, 1]} : vector<1x128xf32> to vector<1x32xf32>
    %124 = vector.extract_strided_slice %112 {offsets = [0, 96], sizes = [1, 32], strides = [1, 1]} : vector<1x128xf32> to vector<1x32xf32>
    %cst_42 = arith.constant 5.000000e-01 : f32
    %125 = vector.broadcast %cst_42 : f32 to vector<1x32xf32>
    %126 = arith.mulf %125, %124 : vector<1x32xf32>
    %cst_43 = arith.constant 5.000000e-01 : f32
    %127 = vector.broadcast %cst_43 : f32 to vector<1x32xf32>
    %128 = arith.addf %126, %127 : vector<1x32xf32>
    %129 = arith.mulf %122, %106 : vector<1x32xf32>
    %130 = arith.mulf %117, %123 : vector<1x32xf32>
    %131 = arith.addf %129, %130 : vector<1x32xf32>
    %132 = math.tanh %131 : vector<1x32xf32>
    %133 = arith.mulf %128, %132 : vector<1x32xf32>
    %134 = vector.extract_strided_slice %5 {offsets = [5, 0], sizes = [1, 128], strides = [1, 1]} : vector<8x128xf32> to vector<1x128xf32>
    %cst_44 = arith.constant dense<0.000000e+00> : vector<1x128xf32>
    %135 = tpu.matmul %133, %6, %cst_44 {dimension_numbers = #tpu.dot_dimension_numbers<[1], [0], [0], [1], [0, 0, 1, 1], [], []>} : vector<1x32xf32>, vector<32x128xf32>, vector<1x128xf32> -> vector<1x128xf32>
    %136 = arith.addf %134, %135 : vector<1x128xf32>
    %137 = math.tanh %136 : vector<1x128xf32>
    %138 = vector.extract_strided_slice %137 {offsets = [0, 0], sizes = [1, 32], strides = [1, 1]} : vector<1x128xf32> to vector<1x32xf32>
    %cst_45 = arith.constant 5.000000e-01 : f32
    %139 = vector.broadcast %cst_45 : f32 to vector<1x32xf32>
    %140 = arith.mulf %139, %138 : vector<1x32xf32>
    %cst_46 = arith.constant 5.000000e-01 : f32
    %141 = vector.broadcast %cst_46 : f32 to vector<1x32xf32>
    %142 = arith.addf %140, %141 : vector<1x32xf32>
    %143 = vector.extract_strided_slice %137 {offsets = [0, 32], sizes = [1, 32], strides = [1, 1]} : vector<1x128xf32> to vector<1x32xf32>
    %cst_47 = arith.constant 5.000000e-01 : f32
    %144 = vector.broadcast %cst_47 : f32 to vector<1x32xf32>
    %145 = arith.mulf %144, %143 : vector<1x32xf32>
    %cst_48 = arith.constant 5.000000e-01 : f32
    %146 = vector.broadcast %cst_48 : f32 to vector<1x32xf32>
    %147 = arith.addf %145, %146 : vector<1x32xf32>
    %148 = vector.extract_strided_slice %137 {offsets = [0, 64], sizes = [1, 32], strides = [1, 1]} : vector<1x128xf32> to vector<1x32xf32>
    %149 = vector.extract_strided_slice %137 {offsets = [0, 96], sizes = [1, 32], strides = [1, 1]} : vector<1x128xf32> to vector<1x32xf32>
    %cst_49 = arith.constant 5.000000e-01 : f32
    %150 = vector.broadcast %cst_49 : f32 to vector<1x32xf32>
    %151 = arith.mulf %150, %149 : vector<1x32xf32>
    %cst_50 = arith.constant 5.000000e-01 : f32
    %152 = vector.broadcast %cst_50 : f32 to vector<1x32xf32>
    %153 = arith.addf %151, %152 : vector<1x32xf32>
    %154 = arith.mulf %147, %131 : vector<1x32xf32>
    %155 = arith.mulf %142, %148 : vector<1x32xf32>
    %156 = arith.addf %154, %155 : vector<1x32xf32>
    %157 = math.tanh %156 : vector<1x32xf32>
    %158 = arith.mulf %153, %157 : vector<1x32xf32>
    %159 = vector.extract_strided_slice %5 {offsets = [6, 0], sizes = [1, 128], strides = [1, 1]} : vector<8x128xf32> to vector<1x128xf32>
    %cst_51 = arith.constant dense<0.000000e+00> : vector<1x128xf32>
    %160 = tpu.matmul %158, %6, %cst_51 {dimension_numbers = #tpu.dot_dimension_numbers<[1], [0], [0], [1], [0, 0, 1, 1], [], []>} : vector<1x32xf32>, vector<32x128xf32>, vector<1x128xf32> -> vector<1x128xf32>
    %161 = arith.addf %159, %160 : vector<1x128xf32>
    %162 = math.tanh %161 : vector<1x128xf32>
    %163 = vector.extract_strided_slice %162 {offsets = [0, 0], sizes = [1, 32], strides = [1, 1]} : vector<1x128xf32> to vector<1x32xf32>
    %cst_52 = arith.constant 5.000000e-01 : f32
    %164 = vector.broadcast %cst_52 : f32 to vector<1x32xf32>
    %165 = arith.mulf %164, %163 : vector<1x32xf32>
    %cst_53 = arith.constant 5.000000e-01 : f32
    %166 = vector.broadcast %cst_53 : f32 to vector<1x32xf32>
    %167 = arith.addf %165, %166 : vector<1x32xf32>
    %168 = vector.extract_strided_slice %162 {offsets = [0, 32], sizes = [1, 32], strides = [1, 1]} : vector<1x128xf32> to vector<1x32xf32>
    %cst_54 = arith.constant 5.000000e-01 : f32
    %169 = vector.broadcast %cst_54 : f32 to vector<1x32xf32>
    %170 = arith.mulf %169, %168 : vector<1x32xf32>
    %cst_55 = arith.constant 5.000000e-01 : f32
    %171 = vector.broadcast %cst_55 : f32 to vector<1x32xf32>
    %172 = arith.addf %170, %171 : vector<1x32xf32>
    %173 = vector.extract_strided_slice %162 {offsets = [0, 64], sizes = [1, 32], strides = [1, 1]} : vector<1x128xf32> to vector<1x32xf32>
    %174 = vector.extract_strided_slice %162 {offsets = [0, 96], sizes = [1, 32], strides = [1, 1]} : vector<1x128xf32> to vector<1x32xf32>
    %cst_56 = arith.constant 5.000000e-01 : f32
    %175 = vector.broadcast %cst_56 : f32 to vector<1x32xf32>
    %176 = arith.mulf %175, %174 : vector<1x32xf32>
    %cst_57 = arith.constant 5.000000e-01 : f32
    %177 = vector.broadcast %cst_57 : f32 to vector<1x32xf32>
    %178 = arith.addf %176, %177 : vector<1x32xf32>
    %179 = arith.mulf %172, %156 : vector<1x32xf32>
    %180 = arith.mulf %167, %173 : vector<1x32xf32>
    %181 = arith.addf %179, %180 : vector<1x32xf32>
    %182 = math.tanh %181 : vector<1x32xf32>
    %183 = arith.mulf %178, %182 : vector<1x32xf32>
    %184 = vector.extract_strided_slice %5 {offsets = [7, 0], sizes = [1, 128], strides = [1, 1]} : vector<8x128xf32> to vector<1x128xf32>
    %cst_58 = arith.constant dense<0.000000e+00> : vector<1x128xf32>
    %185 = tpu.matmul %183, %6, %cst_58 {dimension_numbers = #tpu.dot_dimension_numbers<[1], [0], [0], [1], [0, 0, 1, 1], [], []>} : vector<1x32xf32>, vector<32x128xf32>, vector<1x128xf32> -> vector<1x128xf32>
    %186 = arith.addf %184, %185 : vector<1x128xf32>
    %187 = math.tanh %186 : vector<1x128xf32>
    %188 = vector.extract_strided_slice %187 {offsets = [0, 0], sizes = [1, 32], strides = [1, 1]} : vector<1x128xf32> to vector<1x32xf32>
    %cst_59 = arith.constant 5.000000e-01 : f32
    %189 = vector.broadcast %cst_59 : f32 to vector<1x32xf32>
    %190 = arith.mulf %189, %188 : vector<1x32xf32>
    %cst_60 = arith.constant 5.000000e-01 : f32
    %191 = vector.broadcast %cst_60 : f32 to vector<1x32xf32>
    %192 = arith.addf %190, %191 : vector<1x32xf32>
    %193 = vector.extract_strided_slice %187 {offsets = [0, 32], sizes = [1, 32], strides = [1, 1]} : vector<1x128xf32> to vector<1x32xf32>
    %cst_61 = arith.constant 5.000000e-01 : f32
    %194 = vector.broadcast %cst_61 : f32 to vector<1x32xf32>
    %195 = arith.mulf %194, %193 : vector<1x32xf32>
    %cst_62 = arith.constant 5.000000e-01 : f32
    %196 = vector.broadcast %cst_62 : f32 to vector<1x32xf32>
    %197 = arith.addf %195, %196 : vector<1x32xf32>
    %198 = vector.extract_strided_slice %187 {offsets = [0, 64], sizes = [1, 32], strides = [1, 1]} : vector<1x128xf32> to vector<1x32xf32>
    %199 = vector.extract_strided_slice %187 {offsets = [0, 96], sizes = [1, 32], strides = [1, 1]} : vector<1x128xf32> to vector<1x32xf32>
    %cst_63 = arith.constant 5.000000e-01 : f32
    %200 = vector.broadcast %cst_63 : f32 to vector<1x32xf32>
    %201 = arith.mulf %200, %199 : vector<1x32xf32>
    %cst_64 = arith.constant 5.000000e-01 : f32
    %202 = vector.broadcast %cst_64 : f32 to vector<1x32xf32>
    %203 = arith.addf %201, %202 : vector<1x32xf32>
    %204 = arith.mulf %197, %181 : vector<1x32xf32>
    %205 = arith.mulf %192, %198 : vector<1x32xf32>
    %206 = arith.addf %204, %205 : vector<1x32xf32>
    %207 = math.tanh %206 : vector<1x32xf32>
    %208 = arith.mulf %203, %207 : vector<1x32xf32>
    %209 = tpu.concatenate %33, %58, %83, %108, %133, %158, %183, %208 in 0 : vector<1x32xf32>, vector<1x32xf32>, vector<1x32xf32>, vector<1x32xf32>, vector<1x32xf32>, vector<1x32xf32>, vector<1x32xf32>, vector<1x32xf32> -> vector<8x32xf32>
    %c0_65 = arith.constant 0 : index
    %c0_66 = arith.constant 0 : index
    %210 = vector.load %arg4[%c0_65, %c0_66] : memref<1x32xf32, #tpu.memory_space<vmem>>, vector<1x32xf32>
    %211 = vector.broadcast %210 : vector<1x32xf32> to vector<8x32xf32>
    %212 = arith.mulf %209, %211 : vector<8x32xf32>
    %cst_67 = arith.constant dense<0.000000e+00> : vector<8xf32>
    %213 = vector.multi_reduction <add>, %212, %cst_67 [1] : vector<8x32xf32> to vector<8xf32>
    %214 = vector.shape_cast %213 : vector<8xf32> to vector<8x1xf32>
    %c0_68 = arith.constant 0 : index
    %c0_69 = arith.constant 0 : index
    %215 = vector.load %arg5[%c0_68, %c0_69] : memref<1x1xf32, #tpu.memory_space<vmem>>, vector<1x1xf32>
    %216 = vector.broadcast %215 : vector<1x1xf32> to vector<8x1xf32>
    %217 = arith.addf %214, %216 : vector<8x1xf32>
    %c0_70 = arith.constant 0 : index
    %c0_71 = arith.constant 0 : index
    %218 = vector.load %arg6[%c0_70, %c0_71] : memref<8x1xf32, #tpu.memory_space<vmem>>, vector<8x1xf32>
    tpu.vector_store %arg6[%c0_70, %c0_71], %217 {strides = array<i32>} : memref<8x1xf32, #tpu.memory_space<vmem>>, vector<8x1xf32>,
    return
  }
}

</mosaic_0001>

<bundles_post_ra>
// kernel: lstm_forward.1
= control target key start
LH: loop header
LB: loop body
LE: loop exit
PB: predicated region body
PF: predicated region fallthrough
CT: control target
= control target key end

     0   :  { %s1492_s0 = inlined_call_operand.hbm [shape: f32[8,32], index: 0, kind: input, shape index: {}]   ;;  %s1493_s1 = inlined_call_operand.hbm [shape: f32[32,128], index: 1, kind: input, shape index: {}]   ;;  %s1494_s2 = inlined_call_operand.hbm [shape: f32[32,128], index: 2, kind: input, shape index: {}]   ;;  %s1495_s3 = inlined_call_operand.vmem [shape: f32[1,128], index: 3, kind: input, shape index: {}]   ;;  %s1496_s4 = inlined_call_operand.vmem [shape: f32[1,32], index: 4, kind: input, shape index: {}]   ;;  %s1497_s5 = inlined_call_operand.<no memory space> [shape: f32[1,1], index: 5, kind: input, shape index: {}]   ;;  %s1498_s6 = inlined_call_operand.vmem [shape: f32[8,1], index: 6, kind: output, shape index: {}]  }
   0x1   :  { %v11_v0 = vstv %s1497_s5 }
   0x2   :  { %12 = vst [vmem:[#allocation2] sm:$0x1] %v11_v0 }
   0x3   :  { %13 = vsyncpa [#allocation4], 0 }
   0x4   :  { %14 = vsyncpa [#allocation6], 0  ;;  %s1276_s23 = smov [#allocation5]  }
   0x5   :  { %s30_s24 = sshll.u32 %s1276_s23, 4  ;;  %s31_s24 = int_to_ptr.vmem [resolvable:$true] %s30_s24 }
   0x6   :  { %s1220_s25 = scalar_lea.vmem %s31_s24, 512  ;;  %p1225_p1 = scmp.lt.s32.totalorder %s31_s24, %s31_s24 }
   0x7   :  { %p1221_p0 = scmp.ne.s32.totalorder %s31_s24, %s1220_s25  ;;  %p1226_p2 = scmp.lt.s32.totalorder %s1220_s25, %s1220_s25 }
   0x9   :  { %p1227_p3 = por %p1226_p2, %p1225_p1 }
   0xb   :  { %p1228_p4 = pnand %p1227_p3, %p1221_p0 }
   0xd   :  { %1231 = shalt.err (!%p1228_p4)
}
   0xe   :  { %s1277_s26 = smov 128   ;;  %s1278_s27 = smov 8  }
   0xf   :  { %36 = dma.hbm_to_vmem [thread:$0]  %s1493_s1, 512, %s31_s24, [#allocation6], %s1277_s26, %s1277_s26, %s1278_s27  }
  0x10   :  { %s1279_s5 = smov [#allocation3]   ;;  %s1280_s7 = smov [#allocation7]  }
  0x11   :  { %s21_s30 = sshll.u32 %s1279_s5, 4  ;;  %s42_s8 = sshll.u32 %s1280_s7, 4  ;;  %s22_s30 = int_to_ptr.vmem [resolvable:$true] %s21_s30  ;;  %s43_s8 = int_to_ptr.vmem [resolvable:$true] %s42_s8 }
  0x12   :  { %s1240_s9 = scalar_lea.vmem %s22_s30, 128  ;;  %p1245_p6 = scmp.lt.s32.totalorder %s22_s30, %s22_s30 }
  0x13   :  { %p1241_p5 = scmp.ne.s32.totalorder %s22_s30, %s1240_s9  ;;  %p1246_p7 = scmp.lt.s32.totalorder %s1240_s9, %s1240_s9 }
  0x15   :  { %p1247_p8 = por %p1246_p7, %p1245_p6 }
  0x17   :  { %p1248_p9 = pnand %p1247_p8, %p1241_p5 }
  0x19   :  { %1251 = shalt.err (!%p1248_p9)
}
  0x1a   :  { %24 = dma.hbm_to_vmem [thread:$0]  %s1492_s0, 128, %s22_s30, [#allocation4]  }
  0x1b   :  { %s1260_s12 = scalar_lea.vmem %s43_s8, 512  ;;  %p1265_p11 = scmp.lt.s32.totalorder %s43_s8, %s43_s8 }
  0x1c   :  { %p1261_p10 = scmp.ne.s32.totalorder %s43_s8, %s1260_s12  ;;  %p1266_p12 = scmp.lt.s32.totalorder %s1260_s12, %s1260_s12 }
  0x1e   :  { %p1267_p13 = por %p1266_p12, %p1265_p11 }
  0x20   :  { %p1268_p0 = pnand %p1267_p13, %p1261_p10 }
  0x22   :  { %1271 = shalt.err (!%p1268_p0)
}
  0x23   :  { %48 = dma.hbm_to_vmem [thread:$0]  %s1494_s2, 512, %s43_s8, [#allocation6], %s1277_s26, %s1277_s26, %s1278_s27  }
  0x24   :  { %1272 = dma.done.wait [#allocation4], 128  }
  0x25   :  { %1273 = vsyncadd [#allocation4], 4294967168 }
  0x26   :  { %1274 = dma.done.wait [#allocation6], 1024  }
  0x27   :  { %1275 = vsyncadd [#allocation6], 4294966272  ;;  %v1281_v1 = vmov 0.0   ;;  %vm1282_vm0 = vmmov 0   ;;  %v68_v2 = vld [vmem:[#allocation5 + $0x18] sm:$0xff]  ;;  %v67_v4 = vld [vmem:[#allocation5 + $0x10] sm:$0xff] }
  0x28   :  { %1071 = vmatprep.subr.mxu0 %v1281_v1  ;;  %1082 = vmatprep.subr.mxu1 %v1281_v1  ;;  %v1339_v3 = vld [vmem:[#allocation7 + $0x18] sm:$0xff]  ;;  %v1342_v5 = vld [vmem:[#allocation7 + $0x10] sm:$0xff]  ;;  %v66_v6 = vld [vmem:[#allocation5 + $0x8] sm:$0xff]  ;;  %vm76_vm1 = vcmask 261120   ;;  %s1283_s14 = smov 64   ;;  %s1284_s15 = smov 32  }
  0x29   :  { %1079 = vmatprep.mubr.msk.f32.mxu0 %vm1282_vm0, %v1281_v1  ;;  %1090 = vmatprep.mubr.msk.f32.mxu1 %vm1282_vm0, %v1281_v1  ;;  %v1346_v7 = vld [vmem:[#allocation7 + $0x8] sm:$0xff]  ;;  %v65_v8 = vld [vmem:[#allocation5] sm:$0xff]  ;;  %v64_v10 = vld [vmem:[#allocation3] sm:$0xff]  ;;  %vm968_vm2 = vcmask 1040384   ;;  %vm970_vm3 = vcmask 1041408   ;;  %vm972_vm4 = vcmask 1042432  }
  0x2a   :  { %1072 = vmatpush3.msra.mxu0 %v68_v2  ;;  %1083 = vmatpush3.msra.mxu1 %v1339_v3  ;;  %v1351_v9 = vld [vmem:[#allocation7] sm:$0xff]  ;;  %v1015_v11 = vld [vmem:[%s1495_s3] ss:$0 sm:$0xff]  ;;  %vm974_vm5 = vcmask 1043456   ;;  %vm976_vm6 = vcmask 1044480   ;;  %vm978_vm7 = vcmask 1045504  }
  0x2b   :  { %1073 = vmatprep.subr.mxu0 %v1281_v1  ;;  %1084 = vmatprep.subr.mxu1 %v1281_v1  ;;  %s1285_s17 = smov 96   ;;  %vm980_vm8 = vcmask 1046528   ;;  %vm1007_vm9 = vcmask 7168  }
  0x2c   :  { %1074 = vmatpush3.msra.mxu0 %v67_v4  ;;  %1085 = vmatpush3.msra.mxu1 %v1342_v5 }
  0x2d   :  { %1075 = vmatprep.subr.mxu0 %v1281_v1  ;;  %1086 = vmatprep.subr.mxu1 %v1281_v1 }
  0x2e   :  { %1076 = vmatpush3.msra.mxu0 %v66_v6  ;;  %1087 = vmatpush3.msra.mxu1 %v1346_v7 }
  0x2f   :  { %1077 = vmatprep.subr.mxu0 %v1281_v1  ;;  %1088 = vmatprep.subr.mxu1 %v1281_v1 }
  0x30   :  { %1078 = vmatpush3.msra.mxu0 %v65_v8  ;;  %1089 = vmatpush3.msra.mxu1 %v1351_v9 }
  0x31   :  { %1080 = vmatmul.mubr.msk.f32.vlgmr.msra.gmra.mxu0 %vm76_vm1, %v64_v10  ;;  %1091 = vmatmul.mubr.f32.vlgmr.msra.gmra.mxu1 %v1281_v1 }
  0x32   :  { %1093 = vmatprep.subr.mxu0 %v1281_v1  ;;  %1101 = vmatprep.mubr.msk.f32.mxu0 %vm1282_vm0, %v1281_v1 }
  0x33   :  { %1094 = vmatpush3.msra.mxu0 %v1339_v3  ;;  %1104 = vmatprep.subr.mxu1 %v1281_v1 }
  0x34   :  { %1095 = vmatprep.subr.mxu0 %v1281_v1  ;;  %1105 = vmatpush3.msra.mxu1 %v1339_v3 }
  0x35   :  { %1096 = vmatpush3.msra.mxu0 %v1342_v5  ;;  %1106 = vmatprep.subr.mxu1 %v1281_v1 }
  0x36   :  { %1097 = vmatprep.subr.mxu0 %v1281_v1  ;;  %1107 = vmatpush3.msra.mxu1 %v1342_v5 }
  0x37   :  { %1098 = vmatpush3.msra.mxu0 %v1346_v7  ;;  %1108 = vmatprep.subr.mxu1 %v1281_v1 }
  0x38   :  { %1099 = vmatprep.subr.mxu0 %v1281_v1  ;;  %1109 = vmatpush3.msra.mxu1 %v1346_v7 }
  0x39   :  { %1100 = vmatpush3.msra.mxu0 %v1351_v9  ;;  %1110 = vmatprep.subr.mxu1 %v1281_v1 }
  0x3a   :  { %1111 = vmatpush3.msra.mxu1 %v1351_v9  ;;  %1112 = vmatprep.mubr.msk.f32.mxu1 %vm1282_vm0, %v1281_v1 }
  0x3b   :  { %1115 = vmatprep.subr.mxu0 %v1281_v1  ;;  %1126 = vmatprep.subr.mxu1 %v1281_v1 }
  0xf1   :  { %v146_v12 = vpop.f32.mrf.mxu0  ;;  %v223_v13 = vpop.f32.mrf.mxu1 }
  0xf2   :  { %v1384_v14 = vadd.f32 %v1015_v11, %v146_v12 }
  0xf3   :  { %v1081_v15 = vpop.f32.mrf.mxu0  ;;  %v1092_v16 = vpop.f32.mrf.mxu1 }
  0xf4   :  { %v227_v17 = vadd.f32 %v223_v13, %v1384_v14 }
  0xf6   :  { %1180 = vtanh.f32 %v227_v17 }
 0x103   :  { %v1181_v18 = vpop.eup %1180 }
 0x104   :  { %233 = vrot.lane.b32.xlu0 %v1181_v18, %s1283_s14  ;;  %v229_v19 = vmul.f32 0.5, %v1181_v18 }
 0x106   :  { %v230_v20 = vadd.f32 0.5, %v229_v19 }
 0x108   :  { %v231_v23 = vmul.f32 0.0, %v230_v20 }
 0x176   :  { %v234_v21 = vpop.permute.xlu0 %233 }
 0x177   :  { %v236_v22 = vmul.f32 %v234_v21, %v230_v20 }
 0x179   :  { %238 = vrot.lane.b32.xlu0 %v236_v22, %s1284_s15 }
 0x1eb   :  { %v239_v24 = vpop.permute.xlu0 %238 }
 0x1ec   :  { %v241_v25 = vadd.f32 %v239_v24, %v231_v23 }
 0x1ee   :  { %1182 = vtanh.f32 %v241_v25  ;;  %v331_v39 = vrot.slane %v241_v25, 7 }
 0x1fb   :  { %v1183_v26 = vpop.eup %1182 }
 0x1fc   :  { %244 = vrot.lane.b32.xlu1 %v1183_v26, %s1283_s14 }
 0x26e   :  { %v245_v27 = vpop.permute.xlu1 %244 }
 0x26f   :  { %v1390_v28 = vmul.f32 %v245_v27, %v230_v20 }
 0x271   :  { %249 = vrot.lane.b32.xlu1 %v1390_v28, %s1284_s15 }
 0x2e3   :  { %v250_v29 = vpop.permute.xlu1 %249 }
 0x2e4   :  { %1102 = vmatmul.mubr.msk.f32.vlgmr.msra.gmra.mxu0 %vm76_vm1, %v250_v29 }
 0x2e5   :  { %1116 = vmatpush3.msra.mxu0 %v1339_v3  ;;  %1123 = vmatprep.mubr.msk.f32.mxu0 %vm1282_vm0, %v1281_v1 }
 0x2e6   :  { %1117 = vmatprep.subr.mxu0 %v1281_v1 }
 0x2e7   :  { %1118 = vmatpush3.msra.mxu0 %v1342_v5 }
 0x2e8   :  { %1119 = vmatprep.subr.mxu0 %v1281_v1 }
 0x2e9   :  { %1120 = vmatpush3.msra.mxu0 %v1346_v7 }
 0x2ea   :  { %1121 = vmatprep.subr.mxu0 %v1281_v1 }
 0x2eb   :  { %1122 = vmatpush3.msra.mxu0 %v1351_v9 }
 0x2ec   :  { %1137 = vmatprep.subr.mxu0 %v1281_v1 }
 0x3a4   :  { %v319_v30 = vpop.f32.mrf.mxu0 }
 0x3a5   :  { %v324_v31 = vrot.slane %v319_v30, 7 }
 0x3a6   :  { %v1103_v32 = vpop.f32.mrf.mxu0 }
 0x3a7   :  { %v326_v33 = vadd.f32 %v324_v31, %v1384_v14 }
 0x3a9   :  { %1184 = vtanh.f32 %v326_v33 }
 0x3b6   :  { %v1185_v34 = vpop.eup %1184 }
 0x3b7   :  { %335 = vrot.lane.b32.xlu0 %v1185_v34, %s1283_s14  ;;  %v328_v35 = vmul.f32 0.5, %v1185_v34 }
 0x3b9   :  { %v329_v36 = vadd.f32 0.5, %v328_v35 }
 0x3bb   :  { %v333_v40 = vmul.f32 %v331_v39, %v329_v36 }
 0x429   :  { %v336_v37 = vpop.permute.xlu0 %335 }
 0x42a   :  { %v338_v38 = vmul.f32 %v336_v37, %v329_v36 }
 0x42c   :  { %340 = vrot.lane.b32.xlu1 %v338_v38, %s1284_s15 }
 0x49e   :  { %v341_v41 = vpop.permute.xlu1 %340 }
 0x49f   :  { %v343_v42 = vadd.f32 %v341_v41, %v333_v40 }
 0x4a1   :  { %1186 = vtanh.f32 %v343_v42  ;;  %v434_v57 = vrot.slane %v343_v42, 7 }
 0x4ae   :  { %v1187_v43 = vpop.eup %1186 }
 0x4af   :  { %346 = vrot.lane.b32.xlu0 %v1187_v43, %s1283_s14 }
 0x521   :  { %v347_v44 = vpop.permute.xlu0 %346 }
 0x522   :  { %v349_v45 = vmul.f32 %v347_v44, %v329_v36 }
 0x524   :  { %v351_v46 = vrot.slane %v349_v45, 1  ;;  %v969_v0 = vsel %vm968_vm2, %v1390_v28, %v349_v45 }
 0x526   :  { %352 = vrot.lane.b32.xlu1 %v351_v46, %s1284_s15 }
 0x598   :  { %v353_v47 = vpop.permute.xlu1 %352 }
 0x599   :  { %1113 = vmatmul.mubr.msk.f32.vlgmr.msra.gmra.mxu1 %vm76_vm1, %v353_v47 }
 0x59a   :  { %1127 = vmatpush3.msra.mxu1 %v1339_v3  ;;  %1134 = vmatprep.mubr.msk.f32.mxu1 %vm1282_vm0, %v1281_v1 }
 0x59b   :  { %1128 = vmatprep.subr.mxu1 %v1281_v1 }
 0x59c   :  { %1129 = vmatpush3.msra.mxu1 %v1342_v5 }
 0x59d   :  { %1130 = vmatprep.subr.mxu1 %v1281_v1 }
 0x59e   :  { %1131 = vmatpush3.msra.mxu1 %v1346_v7 }
 0x59f   :  { %1132 = vmatprep.subr.mxu1 %v1281_v1 }
 0x5a0   :  { %1133 = vmatpush3.msra.mxu1 %v1351_v9 }
 0x5a1   :  { %1148 = vmatprep.subr.mxu1 %v1281_v1 }
 0x659   :  { %v422_v48 = vpop.f32.mrf.mxu1 }
 0x65a   :  { %v427_v49 = vrot.slane %v422_v48, 6 }
 0x65b   :  { %v1114_v50 = vpop.f32.mrf.mxu1 }
 0x65c   :  { %v429_v51 = vadd.f32 %v427_v49, %v1384_v14 }
 0x65e   :  { %1188 = vtanh.f32 %v429_v51 }
 0x66b   :  { %v1189_v52 = vpop.eup %1188 }
 0x66c   :  { %438 = vrot.lane.b32.xlu0 %v1189_v52, %s1283_s14  ;;  %v431_v53 = vmul.f32 0.5, %v1189_v52 }
 0x66e   :  { %v432_v54 = vadd.f32 0.5, %v431_v53 }
 0x670   :  { %v436_v58 = vmul.f32 %v434_v57, %v432_v54 }
 0x6de   :  { %v439_v55 = vpop.permute.xlu0 %438 }
 0x6df   :  { %v441_v56 = vmul.f32 %v439_v55, %v432_v54 }
 0x6e1   :  { %443 = vrot.lane.b32.xlu1 %v441_v56, %s1284_s15 }
 0x753   :  { %v444_v59 = vpop.permute.xlu1 %443 }
 0x754   :  { %v446_v60 = vadd.f32 %v444_v59, %v436_v58 }
 0x756   :  { %1190 = vtanh.f32 %v446_v60  ;;  %v537_v19 = vrot.slane %v446_v60, 7 }
 0x763   :  { %v1191_v61 = vpop.eup %1190 }
 0x764   :  { %449 = vrot.lane.b32.xlu0 %v1191_v61, %s1283_s14 }
 0x7d6   :  { %v450_v62 = vpop.permute.xlu0 %449 }
 0x7d7   :  { %v452_v63 = vmul.f32 %v450_v62, %v432_v54 }
 0x7d9   :  { %v454_v2 = vrot.slane %v452_v63, 2  ;;  %v971_v4 = vsel %vm970_vm3, %v969_v0, %v452_v63 }
 0x7db   :  { %455 = vrot.lane.b32.xlu1 %v454_v2, %s1284_s15 }
 0x84d   :  { %v456_v6 = vpop.permute.xlu1 %455 }
 0x84e   :  { %1124 = vmatmul.mubr.msk.f32.vlgmr.msra.gmra.mxu0 %vm76_vm1, %v456_v6 }
 0x84f   :  { %1138 = vmatpush3.msra.mxu0 %v1339_v3  ;;  %1145 = vmatprep.mubr.msk.f32.mxu0 %vm1282_vm0, %v1281_v1 }
 0x850   :  { %1139 = vmatprep.subr.mxu0 %v1281_v1 }
 0x851   :  { %1140 = vmatpush3.msra.mxu0 %v1342_v5 }
 0x852   :  { %1141 = vmatprep.subr.mxu0 %v1281_v1 }
 0x853   :  { %1142 = vmatpush3.msra.mxu0 %v1346_v7 }
 0x854   :  { %1143 = vmatprep.subr.mxu0 %v1281_v1 }
 0x855   :  { %1144 = vmatpush3.msra.mxu0 %v1351_v9 }
 0x856   :  { %1159 = vmatprep.subr.mxu0 %v1281_v1 }
 0x90e   :  { %v525_v8 = vpop.f32.mrf.mxu0 }
 0x90f   :  { %v530_v10 = vrot.slane %v525_v8, 5 }
 0x910   :  { %v1125_v11 = vpop.f32.mrf.mxu0 }
 0x911   :  { %v532_v12 = vadd.f32 %v530_v10, %v1384_v14 }
 0x913   :  { %1192 = vtanh.f32 %v532_v12 }
 0x920   :  { %v1193_v13 = vpop.eup %1192 }
 0x921   :  { %541 = vrot.lane.b32.xlu0 %v1193_v13, %s1283_s14  ;;  %v534_v15 = vmul.f32 0.5, %v1193_v13 }
 0x923   :  { %v535_v16 = vadd.f32 0.5, %v534_v15 }
 0x925   :  { %v539_v20 = vmul.f32 %v537_v19, %v535_v16 }
 0x993   :  { %v542_v17 = vpop.permute.xlu0 %541 }
 0x994   :  { %v544_v18 = vmul.f32 %v542_v17, %v535_v16 }
 0x996   :  { %546 = vrot.lane.b32.xlu1 %v544_v18, %s1284_s15 }
 0xa08   :  { %v547_v21 = vpop.permute.xlu1 %546 }
 0xa09   :  { %v549_v22 = vadd.f32 %v547_v21, %v539_v20 }
 0xa0b   :  { %1194 = vtanh.f32 %v549_v22  ;;  %v640_v38 = vrot.slane %v549_v22, 7 }
 0xa18   :  { %v1195_v23 = vpop.eup %1194 }
 0xa19   :  { %552 = vrot.lane.b32.xlu0 %v1195_v23, %s1283_s14 }
 0xa8b   :  { %v553_v24 = vpop.permute.xlu0 %552 }
 0xa8c   :  { %v555_v25 = vmul.f32 %v553_v24, %v535_v16 }
 0xa8e   :  { %v557_v26 = vrot.slane %v555_v25, 3  ;;  %v973_v27 = vsel %vm972_vm4, %v971_v4, %v555_v25 }
 0xa90   :  { %558 = vrot.lane.b32.xlu1 %v557_v26, %s1284_s15 }
 0xb02   :  { %v559_v28 = vpop.permute.xlu1 %558 }
 0xb03   :  { %1135 = vmatmul.mubr.msk.f32.vlgmr.msra.gmra.mxu1 %vm76_vm1, %v559_v28 }
 0xb04   :  { %1149 = vmatpush3.msra.mxu1 %v1339_v3  ;;  %1156 = vmatprep.mubr.msk.f32.mxu1 %vm1282_vm0, %v1281_v1 }
 0xb05   :  { %1150 = vmatprep.subr.mxu1 %v1281_v1 }
 0xb06   :  { %1151 = vmatpush3.msra.mxu1 %v1342_v5 }
 0xb07   :  { %1152 = vmatprep.subr.mxu1 %v1281_v1 }
 0xb08   :  { %1153 = vmatpush3.msra.mxu1 %v1346_v7 }
 0xb09   :  { %1154 = vmatprep.subr.mxu1 %v1281_v1 }
 0xb0a   :  { %1155 = vmatpush3.msra.mxu1 %v1351_v9 }
 0xbc3   :  { %v628_v29 = vpop.f32.mrf.mxu1 }
 0xbc4   :  { %v633_v30 = vrot.slane %v628_v29, 4 }
 0xbc5   :  { %v1136_v31 = vpop.f32.mrf.mxu1 }
 0xbc6   :  { %v635_v32 = vadd.f32 %v633_v30, %v1384_v14 }
 0xbc8   :  { %1196 = vtanh.f32 %v635_v32  ;;  %v1024_v32 = vld [vmem:[%s1496_s4] ss:$0 sm:$0xff] }
 0xbd5   :  { %v1197_v33 = vpop.eup %1196 }
 0xbd6   :  { %644 = vrot.lane.b32.xlu0 %v1197_v33, %s1283_s14  ;;  %v637_v34 = vmul.f32 0.5, %v1197_v33 }
 0xbd8   :  { %v638_v35 = vadd.f32 0.5, %v637_v34 }
 0xbda   :  { %v642_v39 = vmul.f32 %v640_v38, %v638_v35 }
 0xc48   :  { %v645_v36 = vpop.permute.xlu0 %644 }
 0xc49   :  { %v647_v37 = vmul.f32 %v645_v36, %v638_v35 }
 0xc4b   :  { %649 = vrot.lane.b32.xlu1 %v647_v37, %s1284_s15 }
 0xcbd   :  { %v650_v40 = vpop.permute.xlu1 %649 }
 0xcbe   :  { %v652_v41 = vadd.f32 %v650_v40, %v642_v39 }
 0xcc0   :  { %1198 = vtanh.f32 %v652_v41 }
 0xccd   :  { %v1199_v42 = vpop.eup %1198 }
 0xcce   :  { %655 = vrot.lane.b32.xlu0 %v1199_v42, %s1283_s14 }
 0xd40   :  { %v656_v43 = vpop.permute.xlu0 %655 }
 0xd41   :  { %v658_v44 = vmul.f32 %v656_v43, %v638_v35 }
 0xd43   :  { %v660_v45 = vrot.slane %v658_v44, 4  ;;  %v975_v46 = vsel %vm974_vm5, %v973_v27, %v658_v44  ;;  %v1025_v44 = vld [vmem:[#allocation2] ss:$0 sm:$0xff] }
 0xd45   :  { %661 = vrot.lane.b32.xlu1 %v660_v45, %s1284_s15 }
 0xdb7   :  { %v662_v47 = vpop.permute.xlu1 %661 }
 0xdb8   :  { %1146 = vmatmul.mubr.msk.f32.vlgmr.msra.gmra.mxu0 %vm76_vm1, %v662_v47 }
 0xdb9   :  { %1160 = vmatpush3.msra.mxu0 %v1339_v3  ;;  %1167 = vmatprep.mubr.msk.f32.mxu0 %vm1282_vm0, %v1281_v1 }
 0xdba   :  { %1161 = vmatprep.subr.mxu0 %v1281_v1 }
 0xdbb   :  { %1162 = vmatpush3.msra.mxu0 %v1342_v5 }
 0xdbc   :  { %1163 = vmatprep.subr.mxu0 %v1281_v1 }
 0xdbd   :  { %1164 = vmatpush3.msra.mxu0 %v1346_v7  ;;  %v743_v7 = vrot.slane %v652_v41, 7 }
 0xdbe   :  { %1165 = vmatprep.subr.mxu0 %v1281_v1 }
 0xdbf   :  { %1166 = vmatpush3.msra.mxu0 %v1351_v9 }
 0xe78   :  { %v731_v48 = vpop.f32.mrf.mxu0 }
 0xe79   :  { %v736_v49 = vrot.slane %v731_v48, 3 }
 0xe7a   :  { %v1147_v50 = vpop.f32.mrf.mxu0 }
 0xe7b   :  { %v738_v3 = vadd.f32 %v736_v49, %v1384_v14 }
 0xe7d   :  { %1200 = vtanh.f32 %v738_v3 }
 0xe8a   :  { %v1201_v51 = vpop.eup %1200 }
 0xe8b   :  { %747 = vrot.lane.b32.xlu0 %v1201_v51, %s1283_s14  ;;  %v740_v52 = vmul.f32 0.5, %v1201_v51 }
 0xe8d   :  { %v741_v53 = vadd.f32 0.5, %v740_v52 }
 0xe8f   :  { %v745_v55 = vmul.f32 %v743_v7, %v741_v53 }
 0xefd   :  { %v748_v5 = vpop.permute.xlu0 %747 }
 0xefe   :  { %v750_v54 = vmul.f32 %v748_v5, %v741_v53 }
 0xf00   :  { %752 = vrot.lane.b32.xlu1 %v750_v54, %s1284_s15 }
 0xf72   :  { %v753_v1 = vpop.permute.xlu1 %752 }
 0xf73   :  { %v755_v56 = vadd.f32 %v753_v1, %v745_v55 }
 0xf75   :  { %1202 = vtanh.f32 %v755_v56  ;;  %v846_v12 = vrot.slane %v755_v56, 7 }
 0xf82   :  { %v1203_v9 = vpop.eup %1202 }
 0xf83   :  { %758 = vrot.lane.b32.xlu0 %v1203_v9, %s1283_s14 }
 0xff5   :  { %v759_v57 = vpop.permute.xlu0 %758 }
 0xff6   :  { %v761_v58 = vmul.f32 %v759_v57, %v741_v53 }
 0xff8   :  { %v763_v59 = vrot.slane %v761_v58, 5  ;;  %v977_v60 = vsel %vm976_vm6, %v975_v46, %v761_v58 }
 0xffa   :  { %764 = vrot.lane.b32.xlu1 %v763_v59, %s1284_s15 }
0x106c   :  { %v765_v61 = vpop.permute.xlu1 %764 }
0x106d   :  { %1157 = vmatmul.mubr.msk.f32.vlgmr.msra.gmra.mxu1 %vm76_vm1, %v765_v61 }
0x112d   :  { %v834_v62 = vpop.f32.mrf.mxu1 }
0x112e   :  { %v839_v63 = vrot.slane %v834_v62, 2 }
0x112f   :  { %v1158_v0 = vpop.f32.mrf.mxu1 }
0x1130   :  { %v841_v2 = vadd.f32 %v839_v63, %v1384_v14 }
0x1132   :  { %1204 = vtanh.f32 %v841_v2 }
0x113f   :  { %v1205_v4 = vpop.eup %1204 }
0x1140   :  { %850 = vrot.lane.b32.xlu0 %v1205_v4, %s1283_s14  ;;  %v843_v6 = vmul.f32 0.5, %v1205_v4 }
0x1142   :  { %v844_v8 = vadd.f32 0.5, %v843_v6 }
0x1144   :  { %v848_v13 = vmul.f32 %v846_v12, %v844_v8 }
0x11b2   :  { %v851_v10 = vpop.permute.xlu0 %850 }
0x11b3   :  { %v853_v11 = vmul.f32 %v851_v10, %v844_v8 }
0x11b5   :  { %855 = vrot.lane.b32.xlu1 %v853_v11, %s1284_s15 }
0x1227   :  { %v856_v15 = vpop.permute.xlu1 %855 }
0x1228   :  { %v858_v16 = vadd.f32 %v856_v15, %v848_v13 }
0x122a   :  { %1206 = vtanh.f32 %v858_v16  ;;  %v949_v33 = vrot.slane %v858_v16, 7 }
0x1237   :  { %v1207_v17 = vpop.eup %1206 }
0x1238   :  { %861 = vrot.lane.b32.xlu0 %v1207_v17, %s1283_s14 }
0x12aa   :  { %v862_v18 = vpop.permute.xlu0 %861 }
0x12ab   :  { %v864_v19 = vmul.f32 %v862_v18, %v844_v8 }
0x12ad   :  { %v866_v20 = vrot.slane %v864_v19, 6  ;;  %v979_v21 = vsel %vm978_vm7, %v977_v60, %v864_v19 }
0x12af   :  { %867 = vrot.lane.b32.xlu1 %v866_v20, %s1284_s15 }
0x1321   :  { %v868_v22 = vpop.permute.xlu1 %867 }
0x1322   :  { %1168 = vmatmul.mubr.msk.f32.vlgmr.msra.gmra.mxu0 %vm76_vm1, %v868_v22 }
0x13e2   :  { %v937_v23 = vpop.f32.mrf.mxu0 }
0x13e3   :  { %v942_v24 = vrot.slane %v937_v23, 1 }
0x13e4   :  { %v1169_v25 = vpop.f32.mrf.mxu0 }
0x13e5   :  { %v944_v26 = vadd.f32 %v942_v24, %v1384_v14 }
0x13e7   :  { %1208 = vtanh.f32 %v944_v26 }
0x13f4   :  { %v1209_v27 = vpop.eup %1208 }
0x13f5   :  { %953 = vrot.lane.b32.xlu0 %v1209_v27, %s1283_s14  ;;  %v946_v28 = vmul.f32 0.5, %v1209_v27 }
0x13f7   :  { %v947_v29 = vadd.f32 0.5, %v946_v28 }
0x13f9   :  { %v951_v34 = vmul.f32 %v949_v33, %v947_v29 }
0x1467   :  { %v954_v30 = vpop.permute.xlu0 %953 }
0x1468   :  { %v956_v31 = vmul.f32 %v954_v30, %v947_v29 }
0x146a   :  { %958 = vrot.lane.b32.xlu1 %v956_v31, %s1284_s15 }
0x146e   :  { %988 = vrot.lane.b32.xlu1 %v1024_v32, %s1285_s17 }
0x14dc   :  { %v959_v35 = vpop.permute.xlu1 %958 }
0x14dd   :  { %v961_v14 = vadd.f32 %v959_v35, %v951_v34 }
0x14df   :  { %1210 = vtanh.f32 %v961_v14 }
0x14e0   :  { %v989_v39 = vpop.permute.xlu1 %988 }
0x14ec   :  { %v1211_v36 = vpop.eup %1210 }
0x14ed   :  { %964 = vrot.lane.b32.xlu0 %v1211_v36, %s1283_s14 }
0x155f   :  { %v965_v37 = vpop.permute.xlu0 %964 }
0x1560   :  { %v967_v38 = vmul.f32 %v965_v37, %v947_v29 }
0x1562   :  { %v981_v40 = vsel %vm980_vm8, %v979_v21, %v967_v38 }
0x1563   :  { %v991_v41 = vmul.f32 %v989_v39, %v981_v40 }
0x1565   :  { %993 = vrot.lane.b32.xlu0 %v991_v41, %s1284_s15 }
0x15d7   :  { %v994_v42 = vpop.permute.xlu0 %993 }
0x15d8   :  { %v996_v43 = vsel %vm76_vm1, %v994_v42, 0.0 }
0x15d9   :  { %997 = vadd.xlane.f32.xlu1 %v996_v43 }
0x1662   :  { %v998_v45 = vpop.xlane.xlu1 %997 }
0x1663   :  { %v1006_v46 = vadd.f32 %v1025_v44, %v998_v45 }
0x1665   :  { %1008 = vst.msk [vmem:[%s1498_s6] sm:$0xff] %vm1007_vm9, %v1006_v46 }
0x1666   :  { %1013 = vsyncpa [#allocation4], 1 }
0x1667   :  { %1014 = vsyncpa [#allocation6], 1 }

</bundles_post_ra>
